<compile_context>
chip_gen: v7x
topology: tpu7x:2x2x1
jax: 0.10.0
libtpu: 0.0.40
codegen_flags: <defaults>
</compile_context>

<pallas_src>
import functools

import jax
import jax.numpy as jnp
from jax import lax
from jax.experimental import pallas as pl
from jax.experimental.pallas import tpu as pltpu


def _batch_loss_kernel(a_ref, e_ref, o_ref, sim_acc, ema_acc):
    # a_ref, e_ref : (N, TK) VMEM tiles of the flattened activations
    # o_ref        : (N, N)  VMEM tile (full output, resident across the grid)
    # sim_acc/ema_acc : (N, N) f32 VMEM scratch accumulators
    k = pl.program_id(0)

    @pl.when(k == 0)
    def _():
        sim_acc[...] = jnp.zeros_like(sim_acc)
        ema_acc[...] = jnp.zeros_like(ema_acc)

    a = a_ref[...]
    e = e_ref[...]

    # A @ A.T with the transpose folded into the MXU op (contract dim 1 of both).
    dims = (((1,), (1,)), ((), ()))
    sim_acc[...] += lax.dot_general(a, a, dims, preferred_element_type=jnp.float32)
    ema_acc[...] += lax.dot_general(e, e, dims, preferred_element_type=jnp.float32)

    @pl.when(k == pl.num_programs(0) - 1)
    def _():
        n = o_ref.shape[0]
        sim = sim_acc[...]
        ema = ema_acc[...]
        # Row-wise L2 normalization via rsqrt-and-multiply (EUP, no divides).
        inv_s = lax.rsqrt(jnp.sum(sim * sim, axis=1, keepdims=True))
        inv_e = lax.rsqrt(jnp.sum(ema * ema, axis=1, keepdims=True))
        diff = sim * inv_s - ema * inv_e
        o_ref[...] = (diff * diff) * (1.0 / jnp.float32(n))


def _round_up(x, m):
    return ((x + m - 1) // m) * m


@functools.partial(jax.jit, static_argnames=("batch_size", "world_size", "max_tk"))
def batch_loss(activations, ema_activations, *, batch_size, world_size=1,
               max_tk=2048):
    """Pallas implementation of BatchLoss.forward (single-device path)."""
    assert activations.shape == ema_activations.shape
    N = batch_size * world_size
    # TODO(synk): the world_size > 1 branch uses an autograd all-gather
    # (GatherLayer); the cross-device gather is out of scope for this
    # single-device kernel, so only world_size == 1 is implemented here.
    assert world_size == 1, "distributed gather path not implemented"

    # Flatten to (N, D); keep the native dtype (bf16 streams as bf16).
    a2 = activations.reshape(N, -1)
    e2 = ema_activations.reshape(N, -1)
    D = a2.shape[1]
    itemsize = jnp.dtype(a2.dtype).itemsize

    # ---- Choose the contraction tile TK ------------------------------------
    # Budget for streamed pipeline buffers: 2 inputs x 2 buffers x N x TK bytes,
    # kept <= ~24 MiB so it fits comfortably under v7x's 64 MiB VMEM.
    d_min = _round_up(D, 128)
    stream_budget = 24 * 1024 * 1024
    tk_from_budget = max(128, stream_budget // (4 * N * itemsize))
    tk = min(max_tk, tk_from_budget)
    tk = max(128, (tk // 128) * 128)          # MXU-friendly multiple of 128
    if d_min <= tk:
        tk = d_min                            # single grid step
    d_pad = _round_up(D, tk)

    # Zero-pad D so every tile is full; zero columns don't change A @ A.T.
    if d_pad != D:
        a2 = jnp.pad(a2, ((0, 0), (0, d_pad - D)))
        e2 = jnp.pad(e2, ((0, 0), (0, d_pad - D)))

    grid = (d_pad // tk,)

    # Explicit VMEM budget: streamed double-buffers + accumulators + output.
    stream_bytes = 2 * 2 * N * tk * itemsize
    resident_bytes = 2 * N * N * 4 + 2 * N * N * 4
    vmem_limit = int(min(60 << 20, max(16 << 20, 2 * (stream_bytes + resident_bytes))))

    cost = pl.CostEstimate(
        flops=4 * N * N * D,
        transcendentals=0,
        bytes_accessed=2 * N * D * itemsize + N * N * 4,
    )

    out = pl.pallas_call(
        _batch_loss_kernel,
        out_shape=jax.ShapeDtypeStruct((N, N), jnp.float32),
        grid_spec=pltpu.PrefetchScalarGridSpec(
            num_scalar_prefetch=0,
            grid=grid,
            in_specs=[
                pl.BlockSpec((N, tk), lambda k: (0, k)),
                pl.BlockSpec((N, tk), lambda k: (0, k)),
            ],
            out_specs=pl.BlockSpec((N, N), lambda k: (0, 0)),
            scratch_shapes=[
                pltpu.VMEM((N, N), jnp.float32),
                pltpu.VMEM((N, N), jnp.float32),
            ],
        ),
        compiler_params=pltpu.CompilerParams(
            dimension_semantics=("arbitrary",),   # reduction over D
            vmem_limit_bytes=vmem_limit,
        ),
        cost_estimate=cost,
    )(a2, e2)
    return out


def _reference(activations, ema_activations, N):
    a = activations.reshape(N, -1).astype(jnp.float32)
    e = ema_activations.reshape(N, -1).astype(jnp.float32)
    s = a @ a.T
    s = s / jnp.linalg.norm(s, axis=1, keepdims=True)
    se = e @ e.T
    se = se / jnp.linalg.norm(se, axis=1, keepdims=True)
    return (s - se) ** 2 / N


if __name__ == "__main__":
    key = jax.random.PRNGKey(0)
    k1, k2 = jax.random.split(key)

    batch_size, world_size = 8, 1
    C, H, W = 4, 16, 16  # NCHW activations -> flattened D = 1024

    activations = jax.random.normal(k1, (batch_size, C, H, W), dtype=jnp.float32)
    ema_activations = jax.random.normal(k2, (batch_size, C, H, W), dtype=jnp.float32)

    out = batch_loss(activations, ema_activations,
                     batch_size=batch_size, world_size=world_size)
    out = jax.block_until_ready(out)

    ref = _reference(activations, ema_activations, batch_size * world_size)
    assert out.shape == (batch_size, batch_size)
    assert jnp.allclose(out, ref, atol=1e-5, rtol=1e-5), "mismatch vs reference"

    # Also exercise the multi-step (tiled D) path with a small forced TK.
    out2 = batch_loss(activations, ema_activations,
                      batch_size=batch_size, world_size=world_size, max_tk=256)
    out2 = jax.block_until_ready(out2)
    assert jnp.allclose(out2, ref, atol=1e-5, rtol=1e-5), "tiled-D mismatch"

    print("KERNEL_OK")
</pallas_src>

<mosaic_0001>
module attributes {stable_mosaic.version = 11 : i64} {
  func.func @_batch_loss_kernel(%arg0: i32, %arg1: memref<8x1024xf32, #tpu.memory_space<vmem>>, %arg2: memref<8x1024xf32, #tpu.memory_space<vmem>>, %arg3: memref<8x8xf32, #tpu.memory_space<vmem>>, %arg4: memref<8x8xf32, #tpu.memory_space<vmem>>, %arg5: memref<8x8xf32, #tpu.memory_space<vmem>>) attributes {dimension_semantics = [#tpu.dimension_semantics<arbitrary>], iteration_bounds = array<i64: 1>, scalar_prefetch = 0 : i64, scratch_operands = 2 : i64, tpu.core_type = #tpu.core_type<tc>, window_params = [{transform_indices = @transform_0, window_bounds = array<i64: 8, 1024>}, {transform_indices = @transform_1, window_bounds = array<i64: 8, 1024>}, {pipeline_mode = #tpu.pipeline_mode<synchronous>, transform_indices = @transform_2, window_bounds = array<i64: 8, 8>}]} {
    %c0_i32 = arith.constant 0 : i32
    %0 = arith.cmpi eq, %arg0, %c0_i32 : i32
    %1 = arith.extui %0 : i1 to i32
    %c0_i32_0 = arith.constant 0 : i32
    %2 = arith.cmpi ne, %1, %c0_i32_0 : i32
    scf.if %2 {
      %cst_15 = arith.constant 0.000000e+00 : f32
      %16 = vector.broadcast %cst_15 : f32 to vector<8x8xf32>
      %c0_16 = arith.constant 0 : index
      %c0_17 = arith.constant 0 : index
      %17 = vector.load %arg4[%c0_16, %c0_17] : memref<8x8xf32, #tpu.memory_space<vmem>>, vector<8x8xf32>
      tpu.vector_store %arg4[%c0_16, %c0_17], %16 {strides = array<i32>} : memref<8x8xf32, #tpu.memory_space<vmem>>, vector<8x8xf32>,
      %cst_18 = arith.constant 0.000000e+00 : f32
      %18 = vector.broadcast %cst_18 : f32 to vector<8x8xf32>
      %c0_19 = arith.constant 0 : index
      %c0_20 = arith.constant 0 : index
      %19 = vector.load %arg5[%c0_19, %c0_20] : memref<8x8xf32, #tpu.memory_space<vmem>>, vector<8x8xf32>
      tpu.vector_store %arg5[%c0_19, %c0_20], %18 {strides = array<i32>} : memref<8x8xf32, #tpu.memory_space<vmem>>, vector<8x8xf32>,
    } else {
    }
    %c0 = arith.constant 0 : index
    %c0_1 = arith.constant 0 : index
    %3 = vector.load %arg1[%c0, %c0_1] : memref<8x1024xf32, #tpu.memory_space<vmem>>, vector<8x1024xf32>
    %c0_2 = arith.constant 0 : index
    %c0_3 = arith.constant 0 : index
    %4 = vector.load %arg2[%c0_2, %c0_3] : memref<8x1024xf32, #tpu.memory_space<vmem>>, vector<8x1024xf32>
    %c0_4 = arith.constant 0 : index
    %c0_5 = arith.constant 0 : index
    %5 = vector.load %arg4[%c0_4, %c0_5] : memref<8x8xf32, #tpu.memory_space<vmem>>, vector<8x8xf32>
    %cst = arith.constant dense<0.000000e+00> : vector<8x8xf32>
    %6 = tpu.matmul %3, %3, %cst {dimension_numbers = #tpu.dot_dimension_numbers<[1], [1], [0], [0], [0, 0, 1, 0], [], []>} : vector<8x1024xf32>, vector<8x1024xf32>, vector<8x8xf32> -> vector<8x8xf32>
    %7 = arith.addf %5, %6 : vector<8x8xf32>
    %c0_6 = arith.constant 0 : index
    %c0_7 = arith.constant 0 : index
    %8 = vector.load %arg4[%c0_6, %c0_7] : memref<8x8xf32, #tpu.memory_space<vmem>>, vector<8x8xf32>
    tpu.vector_store %arg4[%c0_6, %c0_7], %7 {strides = array<i32>} : memref<8x8xf32, #tpu.memory_space<vmem>>, vector<8x8xf32>,
    %c0_8 = arith.constant 0 : index
    %c0_9 = arith.constant 0 : index
    %9 = vector.load %arg5[%c0_8, %c0_9] : memref<8x8xf32, #tpu.memory_space<vmem>>, vector<8x8xf32>
    %cst_10 = arith.constant dense<0.000000e+00> : vector<8x8xf32>
    %10 = tpu.matmul %4, %4, %cst_10 {dimension_numbers = #tpu.dot_dimension_numbers<[1], [1], [0], [0], [0, 0, 1, 0], [], []>} : vector<8x1024xf32>, vector<8x1024xf32>, vector<8x8xf32> -> vector<8x8xf32>
    %11 = arith.addf %9, %10 : vector<8x8xf32>
    %c0_11 = arith.constant 0 : index
    %c0_12 = arith.constant 0 : index
    %12 = vector.load %arg5[%c0_11, %c0_12] : memref<8x8xf32, #tpu.memory_space<vmem>>, vector<8x8xf32>
    tpu.vector_store %arg5[%c0_11, %c0_12], %11 {strides = array<i32>} : memref<8x8xf32, #tpu.memory_space<vmem>>, vector<8x8xf32>,
    %c0_i32_13 = arith.constant 0 : i32
    %13 = arith.cmpi eq, %arg0, %c0_i32_13 : i32
    %14 = arith.extui %13 : i1 to i32
    %c0_i32_14 = arith.constant 0 : i32
    %15 = arith.cmpi ne, %14, %c0_i32_14 : i32
    scf.if %15 {
      %c0_15 = arith.constant 0 : index
      %c0_16 = arith.constant 0 : index
      %16 = vector.load %arg4[%c0_15, %c0_16] : memref<8x8xf32, #tpu.memory_space<vmem>>, vector<8x8xf32>
      %c0_17 = arith.constant 0 : index
      %c0_18 = arith.constant 0 : index
      %17 = vector.load %arg5[%c0_17, %c0_18] : memref<8x8xf32, #tpu.memory_space<vmem>>, vector<8x8xf32>
      %18 = arith.mulf %16, %16 : vector<8x8xf32>
      %cst_19 = arith.constant dense<0.000000e+00> : vector<8xf32>
      %19 = vector.multi_reduction <add>, %18, %cst_19 [1] : vector<8x8xf32> to vector<8xf32>
      %20 = vector.shape_cast %19 : vector<8xf32> to vector<8x1xf32>
      %21 = math.rsqrt %20 : vector<8x1xf32>
      %22 = arith.mulf %17, %17 : vector<8x8xf32>
      %cst_20 = arith.constant dense<0.000000e+00> : vector<8xf32>
      %23 = vector.multi_reduction <add>, %22, %cst_20 [1] : vector<8x8xf32> to vector<8xf32>
      %24 = vector.shape_cast %23 : vector<8xf32> to vector<8x1xf32>
      %25 = math.rsqrt %24 : vector<8x1xf32>
      %26 = vector.broadcast %21 : vector<8x1xf32> to vector<8x8xf32>
      %27 = arith.mulf %16, %26 : vector<8x8xf32>
      %28 = vector.broadcast %25 : vector<8x1xf32> to vector<8x8xf32>
      %29 = arith.mulf %17, %28 : vector<8x8xf32>
      %30 = arith.subf %27, %29 : vector<8x8xf32>
      %31 = arith.mulf %30, %30 : vector<8x8xf32>
      %cst_21 = arith.constant 1.000000e+00 : f32
      %cst_22 = arith.constant 8.000000e+00 : f32
      %32 = arith.divf %cst_21, %cst_22 : f32
      %33 = vector.broadcast %32 : f32 to vector<8x8xf32>
      %34 = arith.mulf %31, %33 : vector<8x8xf32>
      %c0_23 = arith.constant 0 : index
      %c0_24 = arith.constant 0 : index
      %35 = vector.load %arg3[%c0_23, %c0_24] : memref<8x8xf32, #tpu.memory_space<vmem>>, vector<8x8xf32>
      tpu.vector_store %arg3[%c0_23, %c0_24], %34 {strides = array<i32>} : memref<8x8xf32, #tpu.memory_space<vmem>>, vector<8x8xf32>,
    } else {
    }
    return
  }
  func.func @transform_0(%arg0: i32) -> (i32, i32) {
    %c0_i32 = arith.constant 0 : i32
    %c0_i32_0 = arith.constant 0 : i32
    return %c0_i32, %arg0 : i32, i32
  }
  func.func @transform_1(%arg0: i32) -> (i32, i32) {
    %c0_i32 = arith.constant 0 : i32
    %c0_i32_0 = arith.constant 0 : i32
    return %c0_i32, %arg0 : i32, i32
  }
  func.func @transform_2(%arg0: i32) -> (i32, i32) {
    %c0_i32 = arith.constant 0 : i32
    %c0_i32_0 = arith.constant 0 : i32
    %c0_i32_1 = arith.constant 0 : i32
    return %c0_i32, %c0_i32_0 : i32, i32
  }
}

</mosaic_0001>

<bundles_post_ra>
// kernel: batch_loss.1
= control target key start
LH: loop header
LB: loop body
LE: loop exit
PB: predicated region body
PF: predicated region fallthrough
CT: control target
= control target key end

     0   :  { %s751_s0 = inlined_call_operand.vmem [shape: f32[8,1024], index: 0, kind: input, shape index: {}]   ;;  %s752_s1 = inlined_call_operand.vmem [shape: f32[8,1024], index: 1, kind: input, shape index: {}]   ;;  %s753_s2 = inlined_call_operand.hbm [shape: f32[8,8], index: 2, kind: output, shape index: {}]  }
   0x1   :  { %v20_v0 = vld [vmem:[%s751_s0 + $0x8] sm:$0xff]  ;;  %v19_v1 = vld [vmem:[%s751_s0] sm:$0xff]  ;;  %v22_v2 = vld [vmem:[%s751_s0 + $0x18] sm:$0xff] }
   0x2   :  { %36 = vmatprep.subr.mxu0 %v20_v0  ;;  %106 = vmatprep.subr.mxu1 %v22_v2  ;;  %v21_v3 = vld [vmem:[%s751_s0 + $0x10] sm:$0xff]  ;;  %v24_v4 = vld [vmem:[%s751_s0 + $0x28] sm:$0xff]  ;;  %v26_v5 = vld [vmem:[%s751_s0 + $0x38] sm:$0xff] }
   0x3   :  { %37 = vmatpush1.xpose.msra.mxu0 %v19_v1  ;;  %107 = vmatpush1.xpose.msra.mxu1 %v21_v3  ;;  %v23_v6 = vld [vmem:[%s751_s0 + $0x20] sm:$0xff]  ;;  %v25_v7 = vld [vmem:[%s751_s0 + $0x30] sm:$0xff]  ;;  %v28_v8 = vld [vmem:[%s752_s1 + $0x8] sm:$0xff] }
   0x4   :  { %100 = vmatprep.mubr.f32.mxu0 %v20_v0  ;;  %170 = vmatprep.mubr.f32.mxu1 %v22_v2  ;;  %v30_v9 = vld [vmem:[%s752_s1 + $0x18] sm:$0xff] }
   0x5   :  { %176 = vmatprep.subr.mxu0 %v24_v4  ;;  %246 = vmatprep.subr.mxu1 %v26_v5 }
   0x6   :  { %101 = vmatmul.mubr.f32.vlgmr.msra.gmra.mrb[0].mxu0 %v19_v1  ;;  %171 = vmatmul.mubr.f32.vlgmr.msra.gmra.mrb[0].mxu1 %v21_v3 }
   0x7   :  { %7 = vsyncpa [#allocation5], 0  ;;  %177 = vmatpush1.xpose.msra.mxu0 %v23_v6  ;;  %247 = vmatpush1.xpose.msra.mxu1 %v25_v7  ;;  %v27_v10 = vld [vmem:[%s752_s1] sm:$0xff]  ;;  %v29_v11 = vld [vmem:[%s752_s1 + $0x10] sm:$0xff]  ;;  %vm16_vm0 = vcmask 64512   ;;  %v667_v16 = vmov 0.0  }
   0x8   :  { %240 = vmatprep.mubr.f32.mxu0 %v24_v4  ;;  %310 = vmatprep.mubr.f32.mxu1 %v26_v5  ;;  %v32_v12 = vld [vmem:[%s752_s1 + $0x28] sm:$0xff]  ;;  %v34_v13 = vld [vmem:[%s752_s1 + $0x38] sm:$0xff]  ;;  %v31_v14 = vld [vmem:[%s752_s1 + $0x20] sm:$0xff]  ;;  %17 = vst.msk [vmem:[#allocation2] sm:$0xff] %vm16_vm0, %v667_v16 }
   0x9   :  { %320 = vmatprep.subr.mxu0 %v28_v8  ;;  %390 = vmatprep.subr.mxu1 %v30_v9  ;;  %v33_v15 = vld [vmem:[%s752_s1 + $0x30] sm:$0xff]  ;;  %18 = vst.msk [vmem:[#allocation3] sm:$0xff] %vm16_vm0, %v667_v16  ;;  %s668_s1 = smov [#allocation4]  }
   0xa   :  { %241 = vmatmul.mubr.f32.vlgmr.msra.gmra.mrb[2].mxu0 %v23_v6  ;;  %311 = vmatmul.mubr.f32.vlgmr.msra.gmra.mrb[2].mxu1 %v25_v7  ;;  %s629_s12 = sshll.u32 %s668_s1, 4  ;;  %s630_s12 = int_to_ptr.vmem [resolvable:$true] %s629_s12 }
   0xb   :  { %321 = vmatpush1.xpose.msra.mxu0 %v27_v10  ;;  %391 = vmatpush1.xpose.msra.mxu1 %v29_v11  ;;  %s643_s13 = scalar_lea.vmem %s630_s12, 128  ;;  %p648_p1 = scmp.lt.s32.totalorder %s630_s12, %s630_s12 }
   0xc   :  { %384 = vmatprep.mubr.f32.mxu0 %v28_v8  ;;  %454 = vmatprep.mubr.f32.mxu1 %v30_v9  ;;  %p644_p0 = scmp.ne.s32.totalorder %s630_s12, %s643_s13  ;;  %p649_p2 = scmp.lt.s32.totalorder %s643_s13, %s643_s13 }
   0xd   :  { %460 = vmatprep.subr.mxu0 %v32_v12  ;;  %530 = vmatprep.subr.mxu1 %v34_v13 }
   0xe   :  { %385 = vmatmul.mubr.f32.vlgmr.msra.gmra.mrb[4].mxu0 %v27_v10  ;;  %455 = vmatmul.mubr.f32.vlgmr.msra.gmra.mrb[4].mxu1 %v29_v11  ;;  %p650_p3 = por %p649_p2, %p648_p1 }
   0xf   :  { %461 = vmatpush1.xpose.msra.mxu0 %v31_v14  ;;  %524 = vmatprep.mubr.f32.mxu0 %v32_v12  ;;  %v35_v27 = vld [vmem:[#allocation2] sm:$0xff] }
  0x10   :  { %531 = vmatpush1.xpose.msra.mxu1 %v33_v15  ;;  %594 = vmatprep.mubr.f32.mxu1 %v34_v13  ;;  %v319_v39 = vld [vmem:[#allocation3] sm:$0xff]  ;;  %p651_p4 = pnand %p650_p3, %p644_p0 }
  0x12   :  { %525 = vmatmul.mubr.f32.vlgmr.msra.gmra.mrb[6].mxu0 %v31_v14 }
  0x13   :  { %595 = vmatmul.mubr.f32.vlgmr.msra.gmra.mrb[6].mxu1 %v33_v15 }
  0xd9   :  { %v102_v17 = vpop.f32.mrb[0].mxu0  ;;  %v172_v18 = vpop.f32.mrb[0].mxu1 }
  0xda   :  { %v104_v19 = vpop.f32.mrb[1].mxu0  ;;  %v173_v20 = vadd.f32 %v172_v18, %v102_v17  ;;  %v174_v21 = vpop.f32.mrb[1].mxu1 }
  0xdd   :  { %v242_v22 = vpop.f32.mrb[2].mxu0  ;;  %v312_v23 = vpop.f32.mrb[2].mxu1 }
  0xde   :  { %v243_v24 = vadd.f32 %v242_v22, %v173_v20  ;;  %v244_v25 = vpop.f32.mrb[3].mxu0  ;;  %v314_v26 = vpop.f32.mrb[3].mxu1 }
  0xe0   :  { %v313_v28 = vadd.f32 %v312_v23, %v243_v24 }
  0xe1   :  { %v386_v29 = vpop.f32.mrb[4].mxu0  ;;  %v456_v30 = vpop.f32.mrb[4].mxu1 }
  0xe2   :  { %v316_v31 = vadd.f32 %v313_v28, %v35_v27  ;;  %v388_v32 = vpop.f32.mrb[5].mxu0  ;;  %v457_v33 = vadd.f32 %v456_v30, %v386_v29  ;;  %v458_v34 = vpop.f32.mrb[5].mxu1 }
  0xe4   :  { %318 = vst.msk [vmem:[#allocation2] sm:$0xff] %vm16_vm0, %v316_v31 }
  0xe5   :  { %v526_v35 = vpop.f32.mrb[6].mxu0 }
  0xe6   :  { %v527_v36 = vadd.f32 %v526_v35, %v457_v33  ;;  %v528_v37 = vpop.f32.mrb[7].mxu0  ;;  %v596_v38 = vpop.f32.mrb[6].mxu1 }
  0xe7   :  { %v598_v40 = vpop.f32.mrb[7].mxu1 }
  0xe8   :  { %v597_v41 = vadd.f32 %v596_v38, %v527_v36 }
  0xea   :  { %v600_v42 = vadd.f32 %v597_v41, %v319_v39 }
  0xeb   :  { %v605_v43 = vld [vmem:[#allocation2] sm:$0xff] }
  0xec   :  { %601 = vst.msk [vmem:[#allocation3] sm:$0xff] %vm16_vm0, %v600_v42  ;;  %v607_v44 = vmul.f32 %v605_v43, %v605_v43 }
  0xee   :  { %v608_v45 = vsel %vm16_vm0, %v607_v44, 0.0 }
  0xef   :  { %609 = vadd.xlane.f32.xlu0 %v608_v45 }
  0xf3   :  { %v606_v46 = vld [vmem:[#allocation3] sm:$0xff] }
  0xf4   :  { %v612_v47 = vmul.f32 %v606_v46, %v606_v46 }
  0xf6   :  { %v613_v48 = vsel %vm16_vm0, %v612_v47, 0.0 }
  0xf7   :  { %614 = vadd.xlane.f32.xlu0 %v613_v48 }
 0x17c   :  { %v610_v49 = vpop.xlane.xlu0 %609 }
 0x17d   :  { %639 = vrsqrt.f32 %v610_v49 }
 0x184   :  { %v615_v50 = vpop.xlane.xlu0 %614 }
 0x185   :  { %641 = vrsqrt.f32 %v615_v50 }
 0x187   :  { %v640_v51 = vpop.eup %639 }
 0x188   :  { %v617_v53 = vmul.f32 %v640_v51, %v605_v43 }
 0x18f   :  { %v642_v52 = vpop.eup %641 }
 0x190   :  { %v618_v54 = vmul.f32 %v642_v52, %v606_v46 }
 0x192   :  { %v619_v55 = vsub.f32 %v617_v53, %v618_v54 }
 0x194   :  { %v620_v56 = vmul.f32 %v619_v55, %v619_v55 }
 0x196   :  { %v621_v57 = vmul.f32 0.125, %v620_v56 }
 0x198   :  { %622 = vst.msk [vmem:[#allocation4] sm:$0xff] %vm16_vm0, %v621_v57 }
 0x199   :  { %654 = shalt.err (!%p651_p4)
}
 0x19a   :  { %s655_s16 = scalar_lea.hbm %s753_s2, 128 }
 0x19b   :  { %p656_p5 = scmp.ne.s32.totalorder %s753_s2, %s655_s16  ;;  %p659_p6 = scmp.lt.u32.totalorder %s655_s16, %s753_s2 }
 0x19d   :  { %p661_p7 = pnand %p659_p6, %p656_p5 }
 0x19f   :  { %664 = shalt.err (!%p661_p7)
}
 0x1a0   :  { %632 = dma.vmem_to_hbm [thread:$0]  %s630_s12, 128, %s753_s2, [#allocation5]  }
 0x1a1   :  { %665 = dma.done.wait [#allocation5], 128  }
 0x1a2   :  { %666 = vsyncadd [#allocation5], 4294967168 }
 0x1a3   :  { %636 = vsyncpa [#allocation5], 1 }

</bundles_post_ra>
